<compile_context>
chip_gen: v7x
topology: tpu7x:2x2x1
jax: 0.10.0
libtpu: 0.0.40
codegen_flags: <defaults>
</compile_context>

<pallas_src>
import jax
import jax.numpy as jnp
from jax.experimental import pallas as pl
from jax.experimental.pallas import tpu as pltpu


NEG_SLOPE = 0.01   # nn.LeakyReLU default negative_slope
LANE = 128


def _round_up(x, m):
    return (x + m - 1) // m * m


def _leaky_relu(x):
    return jnp.where(x > 0, x, NEG_SLOPE * x)


def _classifier_kernel(x_ref, w_ref, b_ref, out_ref):
    # x_ref:   [TM, D]    bf16 batch tile
    # w_ref:   [4, D, D]  bf16 packed, zero-padded weight slab (VMEM-resident)
    # b_ref:   [4, D]     f32  packed, zero-padded bias slab   (VMEM-resident)
    # out_ref: [TM, D]    f32  (num_class padded to D lanes -> lane-dense store)
    x = x_ref[...]
    b = b_ref[...]                       # tiny (4 x D), load once

    # --- encoder ---
    h = jnp.dot(x, w_ref[0], preferred_element_type=jnp.float32) + b[0:1, :]
    h = _leaky_relu(h)
    mu = jnp.dot(h.astype(jnp.bfloat16), w_ref[1],
                 preferred_element_type=jnp.float32) + b[1:2, :]

    # --- classifier head ---
    z = jnp.dot(mu.astype(jnp.bfloat16), w_ref[2],
                preferred_element_type=jnp.float32) + b[2:3, :]
    z = _leaky_relu(z)
    z = jnp.dot(z.astype(jnp.bfloat16), w_ref[3],
                preferred_element_type=jnp.float32) + b[3:4, :]

    out_ref[...] = z.astype(out_ref.dtype)


def pack_params(params):
    """Pack 4 weight matrices / 4 biases into one bf16 slab + one f32 slab.

    All layer dims are rounded up to a common D (multiple of 128); the padding
    is zero so results are numerically identical on the real columns.
    """
    ws = [params["w_h"], params["w_mu"], params["w_fc1"], params["w_fc2"]]
    bs = [params["b_h"], params["b_mu"], params["b_fc1"], params["b_fc2"]]
    dims = set()
    for w in ws:
        dims.add(int(w.shape[0]))
        dims.add(int(w.shape[1]))
    D = max(_round_up(d, LANE) for d in dims)

    w_slab = jnp.zeros((4, D, D), jnp.float32)
    b_slab = jnp.zeros((4, D), jnp.float32)
    for i, (w, b) in enumerate(zip(ws, bs)):
        w_slab = w_slab.at[i, : w.shape[0], : w.shape[1]].set(w)
        b_slab = b_slab.at[i, : b.shape[-1]].set(b.reshape(-1))
    return w_slab.astype(jnp.bfloat16), b_slab, D


def simple_classification_forward(x, params, *, tm=None):
    """x: [B, input_dim] float32.  params: dict of weights/biases (see init_params)."""
    B, input_dim = x.shape
    num_class = params["w_fc2"].shape[1]

    w_slab, b_slab, D = pack_params(params)

    # Batch tile: multiple of 16 (bf16 sublane packing), capped at 512.
    # (Tile of 256-512 hits ~85% of HBM roofline at large B; tiny B collapses
    #  to a single grid step.  All blocks here are far under the v7x 64 MiB /
    #  32 MiB-scoped VMEM budget, so no vmem_limit_bytes override is needed.)
    if tm is None:
        tm = min(512, _round_up(B, 16))
    B_pad = _round_up(B, tm)

    x_p = jnp.zeros((B_pad, D), jnp.bfloat16)
    x_p = x_p.at[:B, :input_dim].set(x.astype(jnp.bfloat16))

    out = pl.pallas_call(
        _classifier_kernel,
        out_shape=jax.ShapeDtypeStruct((B_pad, D), jnp.float32),
        grid_spec=pltpu.PrefetchScalarGridSpec(
            num_scalar_prefetch=0,
            grid=(B_pad // tm,),
            in_specs=[
                pl.BlockSpec((tm, D), lambda i: (i, 0)),       # batch tile
                pl.BlockSpec((4, D, D), lambda i: (0, 0, 0)),  # weights: resident
                pl.BlockSpec((4, D), lambda i: (0, 0)),        # biases:  resident
            ],
            out_specs=pl.BlockSpec((tm, D), lambda i: (i, 0)),
        ),
        compiler_params=pltpu.CompilerParams(
            dimension_semantics=("parallel",),                 # shard batch across TCs (v7x)
        ),
    )(x_p, w_slab, b_slab)

    return out[:B, :num_class]


def init_params(key, input_dim, hidden_dim, latent_dim, latent_class=16, num_class=2):
    """Deterministic synthetic parameters (PyTorch-Linear-like uniform init).

    Weights are stored [in_features, out_features] (transposed vs nn.Linear)."""
    def linear(k, fan_in, fan_out):
        kw, kb = jax.random.split(k)
        bound = 1.0 / jnp.sqrt(fan_in)
        w = jax.random.uniform(kw, (fan_in, fan_out), jnp.float32, -bound, bound)
        b = jax.random.uniform(kb, (1, fan_out), jnp.float32, -bound, bound)
        return w, b

    k1, k2, k3, k4 = jax.random.split(key, 4)
    w_h, b_h = linear(k1, input_dim, hidden_dim)
    w_mu, b_mu = linear(k2, hidden_dim, latent_dim)
    w_fc1, b_fc1 = linear(k3, latent_dim, latent_class)
    w_fc2, b_fc2 = linear(k4, latent_class, num_class)
    return {
        "w_h": w_h, "b_h": b_h,
        "w_mu": w_mu, "b_mu": b_mu,
        "w_fc1": w_fc1, "b_fc1": b_fc1,
        "w_fc2": w_fc2, "b_fc2": b_fc2,
    }


def _reference_forward(x, p):
    """Pure-JAX reference mirroring the kernel's bf16-input / f32-accum numerics."""
    def mm(a, w):
        return jnp.dot(a.astype(jnp.bfloat16), w.astype(jnp.bfloat16),
                       preferred_element_type=jnp.float32)
    h = _leaky_relu(mm(x, p["w_h"]) + p["b_h"])
    mu = mm(h, p["w_mu"]) + p["b_mu"]
    z = _leaky_relu(mm(mu, p["w_fc1"]) + p["b_fc1"])
    return mm(z, p["w_fc2"]) + p["b_fc2"]


if __name__ == "__main__":
    # small shapes consistent with the MLP forward
    B, INPUT_DIM, HIDDEN_DIM, LATENT_DIM = 8, 32, 64, 32
    LATENT_CLASS, NUM_CLASS = 16, 2

    key = jax.random.PRNGKey(0)
    kx, kp = jax.random.split(key)
    x = jax.random.normal(kx, (B, INPUT_DIM), jnp.float32)
    params = init_params(kp, INPUT_DIM, HIDDEN_DIM, LATENT_DIM, LATENT_CLASS, NUM_CLASS)

    out = simple_classification_forward(x, params)
    out = jax.block_until_ready(out)

    ref = _reference_forward(x, params)
    assert out.shape == (B, NUM_CLASS)
    assert jnp.allclose(out, ref, atol=1e-3, rtol=1e-3), "mismatch vs JAX reference"

    print("KERNEL_OK")
</pallas_src>

<mosaic_0001>
module attributes {stable_mosaic.version = 11 : i64} {
  func.func @_classifier_kernel(%arg0: i32, %arg1: memref<16x128xbf16, #tpu.memory_space<vmem>>, %arg2: memref<4x128x128xbf16, #tpu.memory_space<vmem>>, %arg3: memref<4x128xf32, #tpu.memory_space<vmem>>, %arg4: memref<16x128xf32, #tpu.memory_space<vmem>>) attributes {dimension_semantics = [#tpu.dimension_semantics<parallel>], iteration_bounds = array<i64: 1>, scalar_prefetch = 0 : i64, scratch_operands = 0 : i64, tpu.core_type = #tpu.core_type<tc>, window_params = [{transform_indices = @transform_0, window_bounds = array<i64: 16, 128>}, {pipeline_mode = #tpu.pipeline_mode<synchronous>, transform_indices = @transform_1, window_bounds = array<i64: 4, 128, 128>}, {pipeline_mode = #tpu.pipeline_mode<synchronous>, transform_indices = @transform_2, window_bounds = array<i64: 4, 128>}, {transform_indices = @transform_3, window_bounds = array<i64: 16, 128>}]} {
    %c0 = arith.constant 0 : index
    %c0_0 = arith.constant 0 : index
    %0 = vector.load %arg1[%c0, %c0_0] : memref<16x128xbf16, #tpu.memory_space<vmem>>, vector<16x128xbf16>
    %c0_1 = arith.constant 0 : index
    %c0_2 = arith.constant 0 : index
    %1 = vector.load %arg3[%c0_1, %c0_2] : memref<4x128xf32, #tpu.memory_space<vmem>>, vector<4x128xf32>
    %c0_3 = arith.constant 0 : index
    %c0_4 = arith.constant 0 : index
    %c0_5 = arith.constant 0 : index
    %2 = vector.load %arg2[%c0_3, %c0_4, %c0_5] : memref<4x128x128xbf16, #tpu.memory_space<vmem>>, vector<1x128x128xbf16>
    %3 = vector.shape_cast %2 : vector<1x128x128xbf16> to vector<128x128xbf16>
    %cst = arith.constant dense<0.000000e+00> : vector<16x128xf32>
    %4 = tpu.matmul %0, %3, %cst {dimension_numbers = #tpu.dot_dimension_numbers<[1], [0], [0], [1], [0, 0, 1, 1], [], []>} : vector<16x128xbf16>, vector<128x128xbf16>, vector<16x128xf32> -> vector<16x128xf32>
    %5 = vector.extract_strided_slice %1 {offsets = [0, 0], sizes = [1, 128], strides = [1, 1]} : vector<4x128xf32> to vector<1x128xf32>
    %6 = vector.broadcast %5 : vector<1x128xf32> to vector<16x128xf32>
    %7 = arith.addf %4, %6 : vector<16x128xf32>
    %cst_6 = arith.constant 0.000000e+00 : f32
    %8 = vector.broadcast %cst_6 : f32 to vector<16x128xf32>
    %9 = arith.cmpf ogt, %7, %8 : vector<16x128xf32>
    %cst_7 = arith.constant 0.00999999977 : f32
    %10 = vector.broadcast %cst_7 : f32 to vector<16x128xf32>
    %11 = arith.mulf %10, %7 : vector<16x128xf32>
    %12 = arith.select %9, %7, %11 : vector<16x128xi1>, vector<16x128xf32>
    %13 = arith.truncf %12 : vector<16x128xf32> to vector<16x128xbf16>
    %c1 = arith.constant 1 : index
    %c0_8 = arith.constant 0 : index
    %c0_9 = arith.constant 0 : index
    %14 = vector.load %arg2[%c1, %c0_8, %c0_9] : memref<4x128x128xbf16, #tpu.memory_space<vmem>>, vector<1x128x128xbf16>
    %15 = vector.shape_cast %14 : vector<1x128x128xbf16> to vector<128x128xbf16>
    %cst_10 = arith.constant dense<0.000000e+00> : vector<16x128xf32>
    %16 = tpu.matmul %13, %15, %cst_10 {dimension_numbers = #tpu.dot_dimension_numbers<[1], [0], [0], [1], [0, 0, 1, 1], [], []>} : vector<16x128xbf16>, vector<128x128xbf16>, vector<16x128xf32> -> vector<16x128xf32>
    %17 = vector.extract_strided_slice %1 {offsets = [1, 0], sizes = [1, 128], strides = [1, 1]} : vector<4x128xf32> to vector<1x128xf32>
    %18 = vector.broadcast %17 : vector<1x128xf32> to vector<16x128xf32>
    %19 = arith.addf %16, %18 : vector<16x128xf32>
    %20 = arith.truncf %19 : vector<16x128xf32> to vector<16x128xbf16>
    %c2 = arith.constant 2 : index
    %c0_11 = arith.constant 0 : index
    %c0_12 = arith.constant 0 : index
    %21 = vector.load %arg2[%c2, %c0_11, %c0_12] : memref<4x128x128xbf16, #tpu.memory_space<vmem>>, vector<1x128x128xbf16>
    %22 = vector.shape_cast %21 : vector<1x128x128xbf16> to vector<128x128xbf16>
    %cst_13 = arith.constant dense<0.000000e+00> : vector<16x128xf32>
    %23 = tpu.matmul %20, %22, %cst_13 {dimension_numbers = #tpu.dot_dimension_numbers<[1], [0], [0], [1], [0, 0, 1, 1], [], []>} : vector<16x128xbf16>, vector<128x128xbf16>, vector<16x128xf32> -> vector<16x128xf32>
    %24 = vector.extract_strided_slice %1 {offsets = [2, 0], sizes = [1, 128], strides = [1, 1]} : vector<4x128xf32> to vector<1x128xf32>
    %25 = vector.broadcast %24 : vector<1x128xf32> to vector<16x128xf32>
    %26 = arith.addf %23, %25 : vector<16x128xf32>
    %cst_14 = arith.constant 0.000000e+00 : f32
    %27 = vector.broadcast %cst_14 : f32 to vector<16x128xf32>
    %28 = arith.cmpf ogt, %26, %27 : vector<16x128xf32>
    %cst_15 = arith.constant 0.00999999977 : f32
    %29 = vector.broadcast %cst_15 : f32 to vector<16x128xf32>
    %30 = arith.mulf %29, %26 : vector<16x128xf32>
    %31 = arith.select %28, %26, %30 : vector<16x128xi1>, vector<16x128xf32>
    %32 = arith.truncf %31 : vector<16x128xf32> to vector<16x128xbf16>
    %c3 = arith.constant 3 : index
    %c0_16 = arith.constant 0 : index
    %c0_17 = arith.constant 0 : index
    %33 = vector.load %arg2[%c3, %c0_16, %c0_17] : memref<4x128x128xbf16, #tpu.memory_space<vmem>>, vector<1x128x128xbf16>
    %34 = vector.shape_cast %33 : vector<1x128x128xbf16> to vector<128x128xbf16>
    %cst_18 = arith.constant dense<0.000000e+00> : vector<16x128xf32>
    %35 = tpu.matmul %32, %34, %cst_18 {dimension_numbers = #tpu.dot_dimension_numbers<[1], [0], [0], [1], [0, 0, 1, 1], [], []>} : vector<16x128xbf16>, vector<128x128xbf16>, vector<16x128xf32> -> vector<16x128xf32>
    %36 = vector.extract_strided_slice %1 {offsets = [3, 0], sizes = [1, 128], strides = [1, 1]} : vector<4x128xf32> to vector<1x128xf32>
    %37 = vector.broadcast %36 : vector<1x128xf32> to vector<16x128xf32>
    %38 = arith.addf %35, %37 : vector<16x128xf32>
    %c0_19 = arith.constant 0 : index
    %c0_20 = arith.constant 0 : index
    %39 = vector.load %arg4[%c0_19, %c0_20] : memref<16x128xf32, #tpu.memory_space<vmem>>, vector<16x128xf32>
    tpu.vector_store %arg4[%c0_19, %c0_20], %38 {strides = array<i32>} : memref<16x128xf32, #tpu.memory_space<vmem>>, vector<16x128xf32>,
    return
  }
  func.func @transform_0(%arg0: i32) -> (i32, i32) {
    %c0_i32 = arith.constant 0 : i32
    %c0_i32_0 = arith.constant 0 : i32
    return %arg0, %c0_i32 : i32, i32
  }
  func.func @transform_1(%arg0: i32) -> (i32, i32, i32) {
    %c0_i32 = arith.constant 0 : i32
    %c0_i32_0 = arith.constant 0 : i32
    %c0_i32_1 = arith.constant 0 : i32
    %c0_i32_2 = arith.constant 0 : i32
    return %c0_i32, %c0_i32_0, %c0_i32_1 : i32, i32, i32
  }
  func.func @transform_2(%arg0: i32) -> (i32, i32) {
    %c0_i32 = arith.constant 0 : i32
    %c0_i32_0 = arith.constant 0 : i32
    %c0_i32_1 = arith.constant 0 : i32
    return %c0_i32, %c0_i32_0 : i32, i32
  }
  func.func @transform_3(%arg0: i32) -> (i32, i32) {
    %c0_i32 = arith.constant 0 : i32
    %c0_i32_0 = arith.constant 0 : i32
    return %arg0, %c0_i32 : i32, i32
  }
}

</mosaic_0001>

<bundles_post_ra>
// kernel: tpu_custom_call.1
= control target key start
LH: loop header
LB: loop body
LE: loop exit
PB: predicated region body
PF: predicated region fallthrough
CT: control target
= control target key end

     0   :  { %8 = vsyncpa [#allocation3], 0  ;;  %s910_s0 = inlined_call_operand.hbm [shape: bf16[16,128], index: 0, kind: input, shape index: {}]   ;;  %s911_s1 = inlined_call_operand.hbm [shape: bf16[4,128,128], index: 1, kind: input, shape index: {}]   ;;  %s912_s2 = inlined_call_operand.vmem [shape: f32[4,128], index: 2, kind: input, shape index: {}]   ;;  %s913_s3 = inlined_call_operand.hbm [shape: f32[16,128], index: 3, kind: output, shape index: {}]  }
   0x1   :  { %9 = vsyncpa [#allocation6], 0 }
   0x2   :  { %10 = vsyncpa [#allocation4], 0  ;;  %s790_s12 = smov [#allocation2]   ;;  %s718_s16 = scalar_lea.hbm %s910_s0, 128 }
   0x3   :  { %s16_s13 = sshll.u32 %s790_s12, 4  ;;  %p719_p0 = scmp.ne.s32.totalorder %s910_s0, %s718_s16  ;;  %s17_s13 = int_to_ptr.vmem [resolvable:$true] %s16_s13 }
   0x4   :  { %p722_p1 = scmp.lt.u32.totalorder %s718_s16, %s910_s0 }
   0x6   :  { %p724_p2 = pnand %p722_p1, %p719_p0 }
   0x8   :  { %727 = shalt.err (!%p724_p2)
}
   0x9   :  { %s728_s21 = scalar_lea.vmem %s17_s13, 128  ;;  %p733_p4 = scmp.lt.s32.totalorder %s17_s13, %s17_s13 }
   0xa   :  { %p729_p3 = scmp.ne.s32.totalorder %s17_s13, %s728_s21  ;;  %p734_p5 = scmp.lt.s32.totalorder %s728_s21, %s728_s21 }
   0xc   :  { %p735_p6 = por %p734_p5, %p733_p4 }
   0xe   :  { %p736_p7 = pnand %p735_p6, %p729_p3 }
  0x10   :  { %739 = shalt.err (!%p736_p7)
}
  0x11   :  { %s791_s22 = smov 64   ;;  %s792_s23 = smov 4  }
  0x12   :  { %22 = dma.hbm_to_vmem [thread:$0]  %s910_s0, 128, %s17_s13, [#allocation3], %s791_s22, %s791_s22, %s792_s23  }
  0x13   :  { %s793_s26 = smov [#allocation5]   ;;  %s740_s30 = scalar_lea.hbm %s911_s1, 4096 }
  0x14   :  { %s28_s27 = sshll.u32 %s793_s26, 4  ;;  %p741_p8 = scmp.ne.s32.totalorder %s911_s1, %s740_s30  ;;  %s29_s27 = int_to_ptr.vmem [resolvable:$true] %s28_s27 }
  0x15   :  { %p744_p9 = scmp.lt.u32.totalorder %s740_s30, %s911_s1 }
  0x17   :  { %p746_p10 = pnand %p744_p9, %p741_p8 }
  0x19   :  { %749 = shalt.err (!%p746_p10)
}
  0x1a   :  { %s750_s8 = scalar_lea.vmem %s29_s27, 4096  ;;  %p755_p12 = scmp.lt.s32.totalorder %s29_s27, %s29_s27 }
  0x1b   :  { %p751_p11 = scmp.ne.s32.totalorder %s29_s27, %s750_s8  ;;  %p756_p13 = scmp.lt.s32.totalorder %s750_s8, %s750_s8 }
  0x1d   :  { %p757_p0 = por %p756_p13, %p755_p12 }
  0x1f   :  { %p758_p1 = pnand %p757_p0, %p751_p11 }
  0x21   :  { %761 = shalt.err (!%p758_p1)
}
  0x22   :  { %34 = dma.hbm_to_vmem [thread:$0]  %s911_s1, 4096, %s29_s27, [#allocation6], %s791_s22, %s791_s22, %s792_s23  }
  0x23   :  { %784 = dma.done.wait [#allocation3], 128  }
  0x24   :  { %785 = vsyncadd [#allocation3], 4294967168 }
  0x25   :  { %786 = dma.done.wait [#allocation6], 4096  }
  0x26   :  { %787 = vsyncadd [#allocation6], 4294963200  ;;  %v794_v0 = vmov 0.0   ;;  %vm795_vm0 = vmmov 0   ;;  %v685_v1 = vld [vmem:[#allocation5] sm:$0xff]   ;;  %v686_v2 = vld [vmem:[#allocation5 + $0x8] sm:$0xff]   ;;  %v63_v24 = vlaneseq }
  0x27   :  { %596 = vmatprep.subr.bf16.mxu0 %v794_v0  ;;  %612 = vmatprep.mubr.msk.bf16.mxu0 %vm795_vm0, %v794_v0  ;;  %v687_v3 = vld [vmem:[#allocation5 + $0x10] sm:$0xff]   ;;  %v694_v4 = vld [vmem:[#allocation5 + $0x40] sm:$0xff]   ;;  %v688_v5 = vld [vmem:[#allocation5 + $0x18] sm:$0xff]  }
  0x28   :  { %616 = vmatprep.subr.bf16.mxu1 %v794_v0  ;;  %632 = vmatprep.mubr.msk.bf16.mxu1 %vm795_vm0, %v794_v0  ;;  %v695_v6 = vld [vmem:[#allocation5 + $0x48] sm:$0xff]   ;;  %v689_v7 = vld [vmem:[#allocation5 + $0x20] sm:$0xff]   ;;  %v696_v8 = vld [vmem:[#allocation5 + $0x50] sm:$0xff]   ;;  %v873_v25 = vshrl.u32 %v63_v24, 7 }
  0x29   :  { %597 = vmatpush3.bf16.msra.mxu0 %v685_v1  ;;  %617 = vmatpush3.bf16.msra.mxu1 %v694_v4  ;;  %v690_v9 = vld [vmem:[#allocation5 + $0x28] sm:$0xff]   ;;  %v697_v10 = vld [vmem:[#allocation5 + $0x58] sm:$0xff]   ;;  %v691_v11 = vld [vmem:[#allocation5 + $0x30] sm:$0xff]  }
  0x2a   :  { %598 = vmatprep.subr.bf16.mxu0 %v794_v0  ;;  %618 = vmatprep.subr.bf16.mxu1 %v794_v0  ;;  %v698_v12 = vld [vmem:[#allocation5 + $0x60] sm:$0xff]   ;;  %v692_v13 = vld [vmem:[#allocation5 + $0x38] sm:$0xff]   ;;  %v699_v14 = vld [vmem:[#allocation5 + $0x68] sm:$0xff]   ;;  %v65_v26 = vsub.s32 0, %v873_v25  ;;  %v188_v48 = vsub.s32 1, %v873_v25  ;;  %v299_v59 = vsub.s32 2, %v873_v25 }
  0x2b   :  { %v693_v15 = vld [vmem:[#allocation2] sm:$0xff]   ;;  %v700_v16 = vld [vmem:[#allocation5 + $0x70] sm:$0xff]   ;;  %v702_v18 = vld [vmem:[#allocation5 + $0x80] sm:$0xff]  }
  0x2c   :  { %v701_v17 = vld [vmem:[#allocation5 + $0x78] sm:$0xff]   ;;  %v703_v19 = vld [vmem:[#allocation5 + $0x88] sm:$0xff]   ;;  %v704_v20 = vld [vmem:[#allocation5 + $0x90] sm:$0xff]  }
  0x2d   :  { %599 = vmatpush3.bf16.msra.mxu0 %v686_v2  ;;  %619 = vmatpush3.bf16.msra.mxu1 %v695_v6  ;;  %v705_v21 = vld [vmem:[#allocation5 + $0x98] sm:$0xff]   ;;  %v706_v22 = vld [vmem:[#allocation5 + $0xa0] sm:$0xff]   ;;  %v707_v23 = vld [vmem:[#allocation5 + $0xa8] sm:$0xff]  }
  0x2e   :  { %600 = vmatprep.subr.bf16.mxu0 %v794_v0  ;;  %620 = vmatprep.subr.bf16.mxu1 %v794_v0  ;;  %v879_v27 = vld [vmem:[%s912_s2] sm:$0xf]  ;;  %v708_v40 = vld [vmem:[#allocation5 + $0xb0] sm:$0xff]   ;;  %v710_v42 = vld [vmem:[#allocation5 + $0xc0] sm:$0xff]   ;;  %s796_s2 = smov [#allocation7]  }
  0x2f   :  { %v66_v28 = vrot.slane %v879_v27, %v65_v26  ;;  %v709_v41 = vld [vmem:[#allocation5 + $0xb8] sm:$0xff]   ;;  %v711_v43 = vld [vmem:[#allocation5 + $0xc8] sm:$0xff]   ;;  %v712_v44 = vld [vmem:[#allocation5 + $0xd0] sm:$0xff]   ;;  %v189_v49 = vrot.slane %v879_v27, %v188_v48  ;;  %v300_v60 = vrot.slane %v879_v27, %v299_v59  ;;  %s514_s11 = sshll.u32 %s796_s2, 4  ;;  %s515_s11 = int_to_ptr.vmem [resolvable:$true] %s514_s11 }
  0x30   :  { %v713_v45 = vld [vmem:[#allocation5 + $0xd8] sm:$0xff]   ;;  %v714_v46 = vld [vmem:[#allocation5 + $0xe0] sm:$0xff]   ;;  %v715_v47 = vld [vmem:[#allocation5 + $0xe8] sm:$0xff]   ;;  %s762_s12 = scalar_lea.vmem %s515_s11, 256  ;;  %p767_p3 = scmp.lt.s32.totalorder %s515_s11, %s515_s11 }
  0x31   :  { %601 = vmatpush3.bf16.msra.mxu0 %v687_v3  ;;  %621 = vmatpush3.bf16.msra.mxu1 %v696_v8  ;;  %v716_v57 = vld [vmem:[#allocation5 + $0xf0] sm:$0xff]   ;;  %v717_v58 = vld [vmem:[#allocation5 + $0xf8] sm:$0xff]   ;;  %p763_p2 = scmp.ne.s32.totalorder %s515_s11, %s762_s12  ;;  %p768_p4 = scmp.lt.s32.totalorder %s762_s12, %s762_s12 }
  0x32   :  { %602 = vmatprep.subr.bf16.mxu0 %v794_v0  ;;  %622 = vmatprep.subr.bf16.mxu1 %v794_v0 }
  0x33   :  { %p769_p5 = por %p768_p4, %p767_p3 }
  0x35   :  { %603 = vmatpush3.bf16.msra.mxu0 %v688_v5  ;;  %623 = vmatpush3.bf16.msra.mxu1 %v697_v10  ;;  %p770_p6 = pnand %p769_p5, %p763_p2 }
  0x36   :  { %604 = vmatprep.subr.bf16.mxu0 %v794_v0  ;;  %624 = vmatprep.subr.bf16.mxu1 %v794_v0 }
  0x39   :  { %605 = vmatpush3.bf16.msra.mxu0 %v689_v7  ;;  %625 = vmatpush3.bf16.msra.mxu1 %v698_v12 }
  0x3a   :  { %606 = vmatprep.subr.bf16.mxu0 %v794_v0  ;;  %626 = vmatprep.subr.bf16.mxu1 %v794_v0 }
  0x3d   :  { %607 = vmatpush3.bf16.msra.mxu0 %v690_v9  ;;  %627 = vmatpush3.bf16.msra.mxu1 %v699_v14 }
  0x3e   :  { %608 = vmatprep.subr.bf16.mxu0 %v794_v0  ;;  %628 = vmatprep.subr.bf16.mxu1 %v794_v0 }
  0x41   :  { %609 = vmatpush3.bf16.msra.mxu0 %v691_v11  ;;  %629 = vmatpush3.bf16.msra.mxu1 %v700_v16 }
  0x42   :  { %610 = vmatprep.subr.bf16.mxu0 %v794_v0  ;;  %630 = vmatprep.subr.bf16.mxu1 %v794_v0 }
  0x45   :  { %611 = vmatpush3.bf16.msra.mxu0 %v692_v13  ;;  %631 = vmatpush3.bf16.msra.mxu1 %v701_v17 }
  0x46   :  { %636 = vmatprep.subr.bf16.mxu0 %v794_v0  ;;  %656 = vmatprep.subr.bf16.mxu1 %v794_v0 }
  0x48   :  { %613 = vmatmul.mubr.bf16.vlgmr.msra.gmra.mrb[0].mxu0 %v693_v15 }
  0x49   :  { %652 = vmatprep.mubr.msk.bf16.mxu0 %vm795_vm0, %v794_v0  ;;  %637 = vmatpush3.bf16.msra.mxu0 %v702_v18 }
  0x4a   :  { %638 = vmatprep.subr.bf16.mxu0 %v794_v0 }
  0x4d   :  { %639 = vmatpush3.bf16.msra.mxu0 %v703_v19 }
  0x4e   :  { %640 = vmatprep.subr.bf16.mxu0 %v794_v0 }
  0x51   :  { %641 = vmatpush3.bf16.msra.mxu0 %v704_v20 }
  0x52   :  { %642 = vmatprep.subr.bf16.mxu0 %v794_v0 }
  0x55   :  { %643 = vmatpush3.bf16.msra.mxu0 %v705_v21 }
  0x56   :  { %644 = vmatprep.subr.bf16.mxu0 %v794_v0 }
  0x59   :  { %645 = vmatpush3.bf16.msra.mxu0 %v706_v22 }
  0x5a   :  { %646 = vmatprep.subr.bf16.mxu0 %v794_v0 }
  0x5d   :  { %647 = vmatpush3.bf16.msra.mxu0 %v707_v23 }
  0x5e   :  { %648 = vmatprep.subr.bf16.mxu0 %v794_v0 }
  0x61   :  { %649 = vmatpush3.bf16.msra.mxu0 %v708_v40 }
  0x62   :  { %650 = vmatprep.subr.bf16.mxu0 %v794_v0 }
  0x65   :  { %651 = vmatpush3.bf16.msra.mxu0 %v709_v41 }
 0x11b   :  { %v155_v29 = vpop.f32.mrb[0].mxu0 }
 0x11c   :  { %v156_v30 = vadd.f32 %v155_v29, %v66_v28  ;;  %v614_v31 = vpop.f32.mrb[1].mxu0 }
 0x11d   :  { %v158_v32 = vpop.f32.mrb[2].mxu0 }
 0x11e   :  { %v164_v33 = vmul.f32 0.01, %v156_v30  ;;  %v159_v34 = vadd.f32 %v158_v32, %v66_v28  ;;  %v615_v35 = vpop.f32.mrb[3].mxu0  ;;  %vm162_vm1 = vcmp.gt.f32.partialorder %v156_v30, 0.0 }
 0x120   :  { %vm163_vm2 = vcmp.gt.f32.partialorder %v159_v34, 0.0  ;;  %v165_v36 = vmul.f32 0.01, %v159_v34  ;;  %v166_v37 = vsel %vm162_vm1, %v156_v30, %v164_v33 }
 0x122   :  { %v167_v38 = vsel %vm163_vm2, %v159_v34, %v165_v36 }
 0x123   :  { %v168_v39 = vpack.c.bf16 %v167_v38, %v166_v37 }
 0x125   :  { %633 = vmatmul.mubr.bf16.vlgmr.msra.gmra.mrb[0].mxu1 %v168_v39 }
 0x126   :  { %672 = vmatprep.mubr.msk.bf16.mxu1 %vm795_vm0, %v794_v0  ;;  %657 = vmatpush3.bf16.msra.mxu1 %v710_v42 }
 0x127   :  { %658 = vmatprep.subr.bf16.mxu1 %v794_v0 }
 0x12a   :  { %659 = vmatpush3.bf16.msra.mxu1 %v711_v43 }
 0x12b   :  { %660 = vmatprep.subr.bf16.mxu1 %v794_v0 }
 0x12e   :  { %661 = vmatpush3.bf16.msra.mxu1 %v712_v44 }
 0x12f   :  { %662 = vmatprep.subr.bf16.mxu1 %v794_v0 }
 0x132   :  { %663 = vmatpush3.bf16.msra.mxu1 %v713_v45 }
 0x133   :  { %664 = vmatprep.subr.bf16.mxu1 %v794_v0 }
 0x136   :  { %665 = vmatpush3.bf16.msra.mxu1 %v714_v46 }
 0x137   :  { %666 = vmatprep.subr.bf16.mxu1 %v794_v0 }
 0x13a   :  { %667 = vmatpush3.bf16.msra.mxu1 %v715_v47 }
 0x13b   :  { %668 = vmatprep.subr.bf16.mxu1 %v794_v0 }
 0x13e   :  { %669 = vmatpush3.bf16.msra.mxu1 %v716_v57 }
 0x13f   :  { %670 = vmatprep.subr.bf16.mxu1 %v794_v0  ;;  %v416_v0 = vsub.s32 3, %v873_v25 }
 0x141   :  { %v417_v9 = vrot.slane %v879_v27, %v416_v0 }
 0x142   :  { %671 = vmatpush3.bf16.msra.mxu1 %v717_v58 }
 0x1f8   :  { %v272_v50 = vpop.f32.mrb[0].mxu1 }
 0x1f9   :  { %v634_v51 = vpop.f32.mrb[1].mxu1  ;;  %v273_v53 = vadd.f32 %v272_v50, %v189_v49 }
 0x1fa   :  { %v275_v52 = vpop.f32.mrb[2].mxu1 }
 0x1fb   :  { %v276_v54 = vadd.f32 %v275_v52, %v189_v49  ;;  %v635_v55 = vpop.f32.mrb[3].mxu1 }
 0x1fd   :  { %v279_v56 = vpack.c.bf16 %v276_v54, %v273_v53 }
 0x1ff   :  { %653 = vmatmul.mubr.bf16.vlgmr.msra.gmra.mrb[4].mxu0 %v279_v56 }
 0x2d2   :  { %v383_v61 = vpop.f32.mrb[4].mxu0 }
 0x2d3   :  { %v384_v62 = vadd.f32 %v383_v61, %v300_v60  ;;  %v654_v63 = vpop.f32.mrb[5].mxu0 }
 0x2d4   :  { %v386_v1 = vpop.f32.mrb[6].mxu0 }
 0x2d5   :  { %v392_v2 = vmul.f32 0.01, %v384_v62  ;;  %v387_v3 = vadd.f32 %v386_v1, %v300_v60  ;;  %v655_v4 = vpop.f32.mrb[7].mxu0  ;;  %vm390_vm3 = vcmp.gt.f32.partialorder %v384_v62, 0.0 }
 0x2d7   :  { %vm391_vm4 = vcmp.gt.f32.partialorder %v387_v3, 0.0  ;;  %v393_v5 = vmul.f32 0.01, %v387_v3  ;;  %v394_v6 = vsel %vm390_vm3, %v384_v62, %v392_v2 }
 0x2d9   :  { %v395_v7 = vsel %vm391_vm4, %v387_v3, %v393_v5 }
 0x2da   :  { %v396_v8 = vpack.c.bf16 %v395_v7, %v394_v6 }
 0x2dc   :  { %673 = vmatmul.mubr.bf16.vlgmr.msra.gmra.mrb[4].mxu1 %v396_v8 }
 0x3af   :  { %v500_v10 = vpop.f32.mrb[4].mxu1 }
 0x3b0   :  { %v501_v11 = vadd.f32 %v500_v10, %v417_v9  ;;  %v674_v12 = vpop.f32.mrb[5].mxu1 }
 0x3b1   :  { %v503_v13 = vpop.f32.mrb[6].mxu1 }
 0x3b2   :  { %507 = vst [vmem:[#allocation7] sm:$0xff] %v501_v11  ;;  %v504_v14 = vadd.f32 %v503_v13, %v417_v9  ;;  %v675_v15 = vpop.f32.mrb[7].mxu1 }
 0x3b4   :  { %508 = vst [vmem:[#allocation7 + $0x8] sm:$0xff] %v504_v14 }
 0x3b5   :  { %773 = shalt.err (!%p770_p6)
}
 0x3b6   :  { %s774_s15 = scalar_lea.hbm %s913_s3, 256 }
 0x3b7   :  { %p775_p7 = scmp.ne.s32.totalorder %s913_s3, %s774_s15  ;;  %p778_p8 = scmp.lt.u32.totalorder %s774_s15, %s913_s3 }
 0x3b9   :  { %p780_p9 = pnand %p778_p8, %p775_p7 }
 0x3bb   :  { %783 = shalt.err (!%p780_p9)
}
 0x3bc   :  { %s797_s20 = smov 128   ;;  %s798_s21 = smov 8  }
 0x3bd   :  { %520 = dma.vmem_to_hbm [thread:$0]  %s515_s11, 256, %s913_s3, [#allocation4], %s797_s20, %s797_s20, %s798_s21  }
 0x3be   :  { %788 = dma.done.wait [#allocation4], 256  }
 0x3bf   :  { %789 = vsyncadd [#allocation4], 4294967040 }
 0x3c0   :  { %524 = vsyncpa [#allocation3], 1 }
 0x3c1   :  { %525 = vsyncpa [#allocation6], 1 }
 0x3c2   :  { %526 = vsyncpa [#allocation4], 1 }

</bundles_post_ra>
